<compile_context>
chip_gen: v7x
topology: tpu7x:2x2x1
jax: 0.10.0
libtpu: 0.0.40
codegen_flags: <defaults>
</compile_context>

<pallas_src>
import functools

import jax
import jax.numpy as jnp
import numpy as np
from jax import lax
from jax.experimental import pallas as pl
from jax.experimental.pallas import tpu as pltpu


def _wide_attn_kernel(x_ref, wkqv_ref, wu_ref, bu_ref, o_ref, *,
                      n_heads: int, do_mask: bool, compute_dtype,
                      approx_recip: bool):
    """One batch block per grid step; fused QKV + per-head attention + folded union."""
    blk, t, d = x_ref.shape            # block: (batch_block, seq, emb_dim)
    hd = n_heads * d
    scale = jnp.float32(1.0 / (float(d) ** 0.5))   # (q*d**-.25)·(k*d**-.25) == qk*d**-.5

    # (blk, t, d) -> (blk*t, d): merges leading dims only (minor/lane dim untouched)
    # => layout-free.  MXU operands in compute_dtype (bf16 default), f32 accumulate.
    x2 = x_ref[...].reshape(blk * t, d).astype(compute_dtype)

    # --- Fused K|Q|V projection: ONE lane-dense (blk*t, d) @ (d, 3*hd) matmul. ---
    kqv = jnp.dot(x2, wkqv_ref[...], preferred_element_type=jnp.float32)
    kqv = kqv.astype(compute_dtype)    # single down-cast; halves vreg footprint (bf16)
    # hd-aligned slices (128-aligned for d=32, n_heads=4) -> whole-vreg, free.
    k_all = kqv[:, 0:hd].reshape(blk, t, hd)
    q_all = kqv[:, hd:2 * hd].reshape(blk, t, hd)
    v_all = kqv[:, 2 * hd:3 * hd].reshape(blk, t, hd)

    if do_mask:
        # Strictly-upper-triangular (future) mask, built ONCE outside the head loop
        # (JAX does not CSE iota/broadcast).
        row = lax.broadcasted_iota(jnp.int32, (t, t), 0)
        col = lax.broadcasted_iota(jnp.int32, (t, t), 1)
        causal = (col > row)[None, :, :]            # (1, t, t); broadcasts over blk
        neg_big = jnp.float32(-1e30)                # finite stand-in for -inf

    # --- Per-head attention with the union projection folded in. ---
    # Replaces the old (blk, t, hd) VMEM scratch + masked per-head lane stores +
    # readback + final union matmul with a plain f32 accumulator:
    #   out = sum_h softmax(q_h k_h^T) v_h @ Wu.T[h*d:(h+1)*d, :]  + bias
    acc = jnp.zeros((blk * t, d), jnp.float32)
    for h in range(n_heads):                        # n_heads is small and static
        lo, hi = h * d, (h + 1) * d
        q_h = q_all[:, :, lo:hi]                    # (blk, t, d)
        k_h = k_all[:, :, lo:hi]
        v_h = v_all[:, :, lo:hi]

        # Scores: contract the feature axis of both operands (no k.T materialized).
        s = jnp.einsum('bqc,bkc->bqk', q_h, k_h,
                       preferred_element_type=jnp.float32) * scale
        if do_mask:
            s = jnp.where(causal, neg_big, s)

        # Softmax over keys (all f32).
        s = s - jnp.max(s, axis=-1, keepdims=True)
        p = jnp.exp(s)
        denom = jnp.sum(p, axis=-1, keepdims=True)
        # approx=True lowers to a single EUP vrcp in its own VLIW slot; the exact
        # path is only used by the f32 correctness check.
        p = p * pl.reciprocal(denom, approx=approx_recip)

        o_h = jnp.einsum('bqk,bkc->bqc', p.astype(compute_dtype), v_h,
                         preferred_element_type=jnp.float32)
        # Union fold: static, sublane-aligned weight slice; accumulate in f32.
        acc = acc + jnp.dot(o_h.reshape(blk * t, d).astype(compute_dtype),
                            wu_ref[lo:hi, :],
                            preferred_element_type=jnp.float32)

    out = acc + bu_ref[...]                         # bias added once, f32
    # TODO(synk): for non-toy t, switch to flash-style KV tiling (online softmax)
    # instead of materializing the full (t, t) score per head.
    o_ref[...] = out.reshape(blk, t, d).astype(o_ref.dtype)


def wide_self_attention(x, wk, wq, wv, wu, bu, *, n_heads, do_mask=False,
                        batch_block=None, compute_dtype=jnp.bfloat16,
                        approx_softmax_recip=None):
    """Pallas forward of WideSelfAttention.

    x : (bz, t, d);  wk/wq/wv : (n_heads*d, d);  wu : (d, n_heads*d);  bu : (d,)
    compute_dtype: dtype of the MXU operands (bf16 default; f32 = exact test path).
    """
    bz, t, d = x.shape
    hd = n_heads * d
    assert wk.shape == (hd, d) and wq.shape == (hd, d) and wv.shape == (hd, d)
    assert wu.shape == (d, hd) and bu.shape == (d,)

    compute_dtype = np.dtype(compute_dtype)
    if approx_softmax_recip is None:
        approx_softmax_recip = compute_dtype != np.dtype(jnp.float32)

    # ---- Host-side, one-time layout prep ----
    # Fused projection weight (d, 3*hd) = [Wk.T | Wq.T | Wv.T]; union weight
    # pre-transposed; bias made 2-D.  Weights stored in compute_dtype so the
    # kernel never re-casts them.
    wkqv = jnp.concatenate(
        [jnp.asarray(wk).T, jnp.asarray(wq).T, jnp.asarray(wv).T],
        axis=1).astype(compute_dtype)                       # (d, 3*hd)
    wu_t = jnp.asarray(wu).T.astype(compute_dtype)          # (hd, d)
    bu2 = jnp.asarray(bu).reshape(1, d).astype(jnp.float32)

    # ---- Per-generation grid sizing ----
    kind = ""
    try:
        kind = jax.devices()[0].device_kind.lower()
    except Exception:
        pass
    single_core = ("v5" in kind) or ("v6" in kind)          # 1 TensorCore per chip
    if batch_block is None:
        # v5e/v6e: one fat grid step amortizes ~0.35us/step pipeline overhead.
        # v7x/unknown (2 TCs): keep an even >=2-step grid so "parallel" can shard
        # the batch axis across both cores.
        bb = bz if (single_core or bz % 2) else max(1, bz // 2)

        def _est_bytes(b):  # crude per-step f32 footprint of live intermediates
            rows = b * t
            return 4 * (4 * rows * d            # x/out blocks (double-buffered)
                        + 2 * rows * 3 * hd     # fused kqv + k/q/v views
                        + 3 * b * t * t         # score / exp / prob temporaries
                        + rows * d)             # accumulator
        budget = 20 * 1024 * 1024
        while bb > 1 and (bz % bb or _est_bytes(bb) > budget):
            bb -= 1
        batch_block = bb
    assert bz % batch_block == 0

    # Explicit scoped-VMEM limit with headroom: 128 MiB physical on v5e/v6e,
    # only 64 MiB on v7x.
    vmem_limit = (64 if single_core else 40) * 1024 * 1024

    kernel = functools.partial(_wide_attn_kernel, n_heads=n_heads,
                               do_mask=do_mask, compute_dtype=compute_dtype,
                               approx_recip=bool(approx_softmax_recip))

    return pl.pallas_call(
        kernel,
        out_shape=jax.ShapeDtypeStruct((bz, t, d), x.dtype),
        grid=(bz // batch_block,),
        in_specs=[
            pl.BlockSpec((batch_block, t, d), lambda b: (b, 0, 0)),   # x
            pl.BlockSpec((d, 3 * hd), lambda b: (0, 0)),              # [Wk|Wq|Wv].T
            pl.BlockSpec((hd, d), lambda b: (0, 0)),                  # W_union.T
            pl.BlockSpec((1, d), lambda b: (0, 0)),                   # b_union
        ],
        out_specs=pl.BlockSpec((batch_block, t, d), lambda b: (b, 0, 0)),
        compiler_params=pltpu.CompilerParams(
            dimension_semantics=("parallel",),
            vmem_limit_bytes=vmem_limit),
    )(x, wkqv, wu_t, bu2)


def wide_self_attention_ref(x, wk, wq, wv, wu, bu, *, n_heads, do_mask=False):
    """Pure-JAX reference mirroring the PyTorch forward literally (f32)."""
    bz, t, d = x.shape
    k = (x @ wk.T).reshape(bz, t, n_heads, d)
    q = (x @ wq.T).reshape(bz, t, n_heads, d)
    v = (x @ wv.T).reshape(bz, t, n_heads, d)
    k = jnp.transpose(k, (0, 2, 1, 3))            # (bz, h, t, d)
    q = jnp.transpose(q, (0, 2, 1, 3))
    v = jnp.transpose(v, (0, 2, 1, 3))

    inv4 = 1.0 / (float(d) ** 0.25)
    q = q * inv4
    k = k * inv4

    dot = jnp.einsum('bhqc,bhkc->bhqk', q, k)
    if do_mask:
        row = lax.broadcasted_iota(jnp.int32, (t, t), 0)
        col = lax.broadcasted_iota(jnp.int32, (t, t), 1)
        dot = jnp.where((col > row)[None, None], -jnp.inf, dot)
    dot = jax.nn.softmax(dot, axis=-1)
    y = jnp.einsum('bhqk,bhkc->bhqc', dot, v)
    y = jnp.transpose(y, (0, 2, 1, 3)).reshape(bz, t, n_heads * d)
    return y @ wu.T + bu


if __name__ == "__main__":
    # Small shapes consistent with the module: batch=2, seq=8, emb_dim=32, heads=4.
    bz, t, emb_dim, n_heads = 2, 8, 32, 4
    hd = n_heads * emb_dim

    key = jax.random.PRNGKey(0)
    kx, kk, kq, kv, kwu, kbu = jax.random.split(key, 6)

    x = jax.random.normal(kx, (bz, t, emb_dim), dtype=jnp.float32)

    # Deterministic PyTorch-style uniform(-1/sqrt(fan_in), 1/sqrt(fan_in)) init.
    def lin_init(k, shape, fan_in):
        bound = 1.0 / np.sqrt(fan_in)
        return jax.random.uniform(k, shape, jnp.float32, -bound, bound)

    wk = lin_init(kk, (hd, emb_dim), emb_dim)      # K: Linear(d, n_heads*d)
    wq = lin_init(kq, (hd, emb_dim), emb_dim)
    wv = lin_init(kv, (hd, emb_dim), emb_dim)
    wu = lin_init(kwu, (emb_dim, hd), hd)          # union: Linear(n_heads*d, d)
    bu = lin_init(kbu, (emb_dim,), hd)

    for do_mask in (False, True):
        ref = wide_self_attention_ref(x, wk, wq, wv, wu, bu,
                                      n_heads=n_heads, do_mask=do_mask)

        # Exact path (f32 MXU operands, exact reciprocal): tight check.
        out_f32 = wide_self_attention(x, wk, wq, wv, wu, bu,
                                      n_heads=n_heads, do_mask=do_mask,
                                      compute_dtype=jnp.float32)
        out_f32 = jax.block_until_ready(out_f32)
        np.testing.assert_allclose(np.asarray(out_f32), np.asarray(ref),
                                   rtol=2e-5, atol=2e-5)

        # Default fast path (bf16 MXU operands, approx EUP reciprocal): loose check.
        out_bf16 = wide_self_attention(x, wk, wq, wv, wu, bu,
                                       n_heads=n_heads, do_mask=do_mask)
        out_bf16 = jax.block_until_ready(out_bf16)
        np.testing.assert_allclose(np.asarray(out_bf16), np.asarray(ref),
                                   rtol=5e-2, atol=5e-2)

    print("KERNEL_OK")
</pallas_src>

<mosaic_0001>
module attributes {stable_mosaic.version = 11 : i64} {
  func.func @_wide_attn_kernel(%arg0: i32, %arg1: memref<1x8x32xf32, #tpu.memory_space<vmem>>, %arg2: memref<32x384xf32, #tpu.memory_space<vmem>>, %arg3: memref<128x32xf32, #tpu.memory_space<vmem>>, %arg4: memref<1x32xf32, #tpu.memory_space<vmem>>, %arg5: memref<1x8x32xf32, #tpu.memory_space<vmem>>) attributes {dimension_semantics = [#tpu.dimension_semantics<parallel>], iteration_bounds = array<i64: 2>, scalar_prefetch = 0 : i64, scratch_operands = 0 : i64, tpu.core_type = #tpu.core_type<tc>, window_params = [{transform_indices = @transform_0, window_bounds = array<i64: 1, 8, 32>}, {pipeline_mode = #tpu.pipeline_mode<synchronous>, transform_indices = @transform_1, window_bounds = array<i64: 32, 384>}, {pipeline_mode = #tpu.pipeline_mode<synchronous>, transform_indices = @transform_2, window_bounds = array<i64: 128, 32>}, {pipeline_mode = #tpu.pipeline_mode<synchronous>, transform_indices = @transform_3, window_bounds = array<i64: 1, 32>}, {transform_indices = @transform_4, window_bounds = array<i64: 1, 8, 32>}]} {
    %c0 = arith.constant 0 : index
    %c0_0 = arith.constant 0 : index
    %c0_1 = arith.constant 0 : index
    %0 = vector.load %arg1[%c0, %c0_0, %c0_1] : memref<1x8x32xf32, #tpu.memory_space<vmem>>, vector<1x8x32xf32>
    %1 = vector.shape_cast %0 : vector<1x8x32xf32> to vector<8x32xf32>
    %c0_2 = arith.constant 0 : index
    %c0_3 = arith.constant 0 : index
    %2 = vector.load %arg2[%c0_2, %c0_3] : memref<32x384xf32, #tpu.memory_space<vmem>>, vector<32x384xf32>
    %cst = arith.constant dense<0.000000e+00> : vector<8x384xf32>
    %3 = tpu.matmul %1, %2, %cst {dimension_numbers = #tpu.dot_dimension_numbers<[1], [0], [0], [1], [0, 0, 1, 1], [], []>} : vector<8x32xf32>, vector<32x384xf32>, vector<8x384xf32> -> vector<8x384xf32>
    %4 = vector.extract_strided_slice %3 {offsets = [0, 0], sizes = [8, 128], strides = [1, 1]} : vector<8x384xf32> to vector<8x128xf32>
    %5 = vector.shape_cast %4 : vector<8x128xf32> to vector<1x8x128xf32>
    %6 = vector.extract_strided_slice %3 {offsets = [0, 128], sizes = [8, 128], strides = [1, 1]} : vector<8x384xf32> to vector<8x128xf32>
    %7 = vector.shape_cast %6 : vector<8x128xf32> to vector<1x8x128xf32>
    %8 = vector.extract_strided_slice %3 {offsets = [0, 256], sizes = [8, 128], strides = [1, 1]} : vector<8x384xf32> to vector<8x128xf32>
    %9 = vector.shape_cast %8 : vector<8x128xf32> to vector<1x8x128xf32>
    %cst_4 = arith.constant 0.000000e+00 : f32
    %10 = vector.broadcast %cst_4 : f32 to vector<8x32xf32>
    %11 = vector.extract_strided_slice %7 {offsets = [0, 0, 0], sizes = [1, 8, 32], strides = [1, 1, 1]} : vector<1x8x128xf32> to vector<1x8x32xf32>
    %12 = vector.extract_strided_slice %5 {offsets = [0, 0, 0], sizes = [1, 8, 32], strides = [1, 1, 1]} : vector<1x8x128xf32> to vector<1x8x32xf32>
    %13 = vector.extract_strided_slice %9 {offsets = [0, 0, 0], sizes = [1, 8, 32], strides = [1, 1, 1]} : vector<1x8x128xf32> to vector<1x8x32xf32>
    "tpu.trace_start"() <{level = 10 : i32, message = "bqc,bkc->bqk"}> : () -> ()
    %cst_5 = arith.constant dense<0.000000e+00> : vector<1x8x8xf32>
    %14 = tpu.matmul %11, %12, %cst_5 {dimension_numbers = #tpu.dot_dimension_numbers<[2], [2], [1], [1], [0, 0, 0, 1, 1, 1], [0], [0]>} : vector<1x8x32xf32>, vector<1x8x32xf32>, vector<1x8x8xf32> -> vector<1x8x8xf32>
    "tpu.trace_stop"() : () -> ()
    %cst_6 = arith.constant 0.176776692 : f32
    %15 = vector.broadcast %cst_6 : f32 to vector<1x8x8xf32>
    %16 = arith.mulf %14, %15 : vector<1x8x8xf32>
    %cst_7 = arith.constant dense<0xFF800000> : vector<1x8xf32>
    %17 = vector.multi_reduction <maximumf>, %16, %cst_7 [2] : vector<1x8x8xf32> to vector<1x8xf32>
    %18 = vector.shape_cast %17 : vector<1x8xf32> to vector<1x8x1xf32>
    %19 = vector.broadcast %18 : vector<1x8x1xf32> to vector<1x8x8xf32>
    %20 = arith.subf %16, %19 : vector<1x8x8xf32>
    %21 = math.exp %20 : vector<1x8x8xf32>
    %cst_8 = arith.constant dense<0.000000e+00> : vector<1x8xf32>
    %22 = vector.multi_reduction <add>, %21, %cst_8 [2] : vector<1x8x8xf32> to vector<1x8xf32>
    %23 = vector.shape_cast %22 : vector<1x8xf32> to vector<1x8x1xf32>
    %24 = tpu.reciprocal %23 : vector<1x8x1xf32> -> vector<1x8x1xf32>
    %25 = vector.broadcast %24 : vector<1x8x1xf32> to vector<1x8x8xf32>
    %26 = arith.mulf %21, %25 : vector<1x8x8xf32>
    "tpu.trace_start"() <{level = 10 : i32, message = "bqk,bkc->bqc"}> : () -> ()
    %cst_9 = arith.constant dense<0.000000e+00> : vector<1x8x32xf32>
    %27 = tpu.matmul %26, %13, %cst_9 {dimension_numbers = #tpu.dot_dimension_numbers<[2], [1], [1], [2], [0, 0, 0, 1, 1, 2], [0], [0]>} : vector<1x8x8xf32>, vector<1x8x32xf32>, vector<1x8x32xf32> -> vector<1x8x32xf32>
    "tpu.trace_stop"() : () -> ()
    %28 = vector.shape_cast %27 : vector<1x8x32xf32> to vector<8x32xf32>
    %c0_10 = arith.constant 0 : index
    %c0_11 = arith.constant 0 : index
    %29 = vector.load %arg3[%c0_10, %c0_11] : memref<128x32xf32, #tpu.memory_space<vmem>>, vector<32x32xf32>
    %cst_12 = arith.constant dense<0.000000e+00> : vector<8x32xf32>
    %30 = tpu.matmul %28, %29, %cst_12 {dimension_numbers = #tpu.dot_dimension_numbers<[1], [0], [0], [1], [0, 0, 1, 1], [], []>} : vector<8x32xf32>, vector<32x32xf32>, vector<8x32xf32> -> vector<8x32xf32>
    %31 = arith.addf %10, %30 : vector<8x32xf32>
    %32 = vector.extract_strided_slice %7 {offsets = [0, 0, 32], sizes = [1, 8, 32], strides = [1, 1, 1]} : vector<1x8x128xf32> to vector<1x8x32xf32>
    %33 = vector.extract_strided_slice %5 {offsets = [0, 0, 32], sizes = [1, 8, 32], strides = [1, 1, 1]} : vector<1x8x128xf32> to vector<1x8x32xf32>
    %34 = vector.extract_strided_slice %9 {offsets = [0, 0, 32], sizes = [1, 8, 32], strides = [1, 1, 1]} : vector<1x8x128xf32> to vector<1x8x32xf32>
    "tpu.trace_start"() <{level = 10 : i32, message = "bqc,bkc->bqk"}> : () -> ()
    %cst_13 = arith.constant dense<0.000000e+00> : vector<1x8x8xf32>
    %35 = tpu.matmul %32, %33, %cst_13 {dimension_numbers = #tpu.dot_dimension_numbers<[2], [2], [1], [1], [0, 0, 0, 1, 1, 1], [0], [0]>} : vector<1x8x32xf32>, vector<1x8x32xf32>, vector<1x8x8xf32> -> vector<1x8x8xf32>
    "tpu.trace_stop"() : () -> ()
    %cst_14 = arith.constant 0.176776692 : f32
    %36 = vector.broadcast %cst_14 : f32 to vector<1x8x8xf32>
    %37 = arith.mulf %35, %36 : vector<1x8x8xf32>
    %cst_15 = arith.constant dense<0xFF800000> : vector<1x8xf32>
    %38 = vector.multi_reduction <maximumf>, %37, %cst_15 [2] : vector<1x8x8xf32> to vector<1x8xf32>
    %39 = vector.shape_cast %38 : vector<1x8xf32> to vector<1x8x1xf32>
    %40 = vector.broadcast %39 : vector<1x8x1xf32> to vector<1x8x8xf32>
    %41 = arith.subf %37, %40 : vector<1x8x8xf32>
    %42 = math.exp %41 : vector<1x8x8xf32>
    %cst_16 = arith.constant dense<0.000000e+00> : vector<1x8xf32>
    %43 = vector.multi_reduction <add>, %42, %cst_16 [2] : vector<1x8x8xf32> to vector<1x8xf32>
    %44 = vector.shape_cast %43 : vector<1x8xf32> to vector<1x8x1xf32>
    %45 = tpu.reciprocal %44 : vector<1x8x1xf32> -> vector<1x8x1xf32>
    %46 = vector.broadcast %45 : vector<1x8x1xf32> to vector<1x8x8xf32>
    %47 = arith.mulf %42, %46 : vector<1x8x8xf32>
    "tpu.trace_start"() <{level = 10 : i32, message = "bqk,bkc->bqc"}> : () -> ()
    %cst_17 = arith.constant dense<0.000000e+00> : vector<1x8x32xf32>
    %48 = tpu.matmul %47, %34, %cst_17 {dimension_numbers = #tpu.dot_dimension_numbers<[2], [1], [1], [2], [0, 0, 0, 1, 1, 2], [0], [0]>} : vector<1x8x8xf32>, vector<1x8x32xf32>, vector<1x8x32xf32> -> vector<1x8x32xf32>
    "tpu.trace_stop"() : () -> ()
    %49 = vector.shape_cast %48 : vector<1x8x32xf32> to vector<8x32xf32>
    %c32 = arith.constant 32 : index
    %c0_18 = arith.constant 0 : index
    %50 = vector.load %arg3[%c32, %c0_18] : memref<128x32xf32, #tpu.memory_space<vmem>>, vector<32x32xf32>
    %cst_19 = arith.constant dense<0.000000e+00> : vector<8x32xf32>
    %51 = tpu.matmul %49, %50, %cst_19 {dimension_numbers = #tpu.dot_dimension_numbers<[1], [0], [0], [1], [0, 0, 1, 1], [], []>} : vector<8x32xf32>, vector<32x32xf32>, vector<8x32xf32> -> vector<8x32xf32>
    %52 = arith.addf %31, %51 : vector<8x32xf32>
    %53 = vector.extract_strided_slice %7 {offsets = [0, 0, 64], sizes = [1, 8, 32], strides = [1, 1, 1]} : vector<1x8x128xf32> to vector<1x8x32xf32>
    %54 = vector.extract_strided_slice %5 {offsets = [0, 0, 64], sizes = [1, 8, 32], strides = [1, 1, 1]} : vector<1x8x128xf32> to vector<1x8x32xf32>
    %55 = vector.extract_strided_slice %9 {offsets = [0, 0, 64], sizes = [1, 8, 32], strides = [1, 1, 1]} : vector<1x8x128xf32> to vector<1x8x32xf32>
    "tpu.trace_start"() <{level = 10 : i32, message = "bqc,bkc->bqk"}> : () -> ()
    %cst_20 = arith.constant dense<0.000000e+00> : vector<1x8x8xf32>
    %56 = tpu.matmul %53, %54, %cst_20 {dimension_numbers = #tpu.dot_dimension_numbers<[2], [2], [1], [1], [0, 0, 0, 1, 1, 1], [0], [0]>} : vector<1x8x32xf32>, vector<1x8x32xf32>, vector<1x8x8xf32> -> vector<1x8x8xf32>
    "tpu.trace_stop"() : () -> ()
    %cst_21 = arith.constant 0.176776692 : f32
    %57 = vector.broadcast %cst_21 : f32 to vector<1x8x8xf32>
    %58 = arith.mulf %56, %57 : vector<1x8x8xf32>
    %cst_22 = arith.constant dense<0xFF800000> : vector<1x8xf32>
    %59 = vector.multi_reduction <maximumf>, %58, %cst_22 [2] : vector<1x8x8xf32> to vector<1x8xf32>
    %60 = vector.shape_cast %59 : vector<1x8xf32> to vector<1x8x1xf32>
    %61 = vector.broadcast %60 : vector<1x8x1xf32> to vector<1x8x8xf32>
    %62 = arith.subf %58, %61 : vector<1x8x8xf32>
    %63 = math.exp %62 : vector<1x8x8xf32>
    %cst_23 = arith.constant dense<0.000000e+00> : vector<1x8xf32>
    %64 = vector.multi_reduction <add>, %63, %cst_23 [2] : vector<1x8x8xf32> to vector<1x8xf32>
    %65 = vector.shape_cast %64 : vector<1x8xf32> to vector<1x8x1xf32>
    %66 = tpu.reciprocal %65 : vector<1x8x1xf32> -> vector<1x8x1xf32>
    %67 = vector.broadcast %66 : vector<1x8x1xf32> to vector<1x8x8xf32>
    %68 = arith.mulf %63, %67 : vector<1x8x8xf32>
    "tpu.trace_start"() <{level = 10 : i32, message = "bqk,bkc->bqc"}> : () -> ()
    %cst_24 = arith.constant dense<0.000000e+00> : vector<1x8x32xf32>
    %69 = tpu.matmul %68, %55, %cst_24 {dimension_numbers = #tpu.dot_dimension_numbers<[2], [1], [1], [2], [0, 0, 0, 1, 1, 2], [0], [0]>} : vector<1x8x8xf32>, vector<1x8x32xf32>, vector<1x8x32xf32> -> vector<1x8x32xf32>
    "tpu.trace_stop"() : () -> ()
    %70 = vector.shape_cast %69 : vector<1x8x32xf32> to vector<8x32xf32>
    %c64 = arith.constant 64 : index
    %c0_25 = arith.constant 0 : index
    %71 = vector.load %arg3[%c64, %c0_25] : memref<128x32xf32, #tpu.memory_space<vmem>>, vector<32x32xf32>
    %cst_26 = arith.constant dense<0.000000e+00> : vector<8x32xf32>
    %72 = tpu.matmul %70, %71, %cst_26 {dimension_numbers = #tpu.dot_dimension_numbers<[1], [0], [0], [1], [0, 0, 1, 1], [], []>} : vector<8x32xf32>, vector<32x32xf32>, vector<8x32xf32> -> vector<8x32xf32>
    %73 = arith.addf %52, %72 : vector<8x32xf32>
    %74 = vector.extract_strided_slice %7 {offsets = [0, 0, 96], sizes = [1, 8, 32], strides = [1, 1, 1]} : vector<1x8x128xf32> to vector<1x8x32xf32>
    %75 = vector.extract_strided_slice %5 {offsets = [0, 0, 96], sizes = [1, 8, 32], strides = [1, 1, 1]} : vector<1x8x128xf32> to vector<1x8x32xf32>
    %76 = vector.extract_strided_slice %9 {offsets = [0, 0, 96], sizes = [1, 8, 32], strides = [1, 1, 1]} : vector<1x8x128xf32> to vector<1x8x32xf32>
    "tpu.trace_start"() <{level = 10 : i32, message = "bqc,bkc->bqk"}> : () -> ()
    %cst_27 = arith.constant dense<0.000000e+00> : vector<1x8x8xf32>
    %77 = tpu.matmul %74, %75, %cst_27 {dimension_numbers = #tpu.dot_dimension_numbers<[2], [2], [1], [1], [0, 0, 0, 1, 1, 1], [0], [0]>} : vector<1x8x32xf32>, vector<1x8x32xf32>, vector<1x8x8xf32> -> vector<1x8x8xf32>
    "tpu.trace_stop"() : () -> ()
    %cst_28 = arith.constant 0.176776692 : f32
    %78 = vector.broadcast %cst_28 : f32 to vector<1x8x8xf32>
    %79 = arith.mulf %77, %78 : vector<1x8x8xf32>
    %cst_29 = arith.constant dense<0xFF800000> : vector<1x8xf32>
    %80 = vector.multi_reduction <maximumf>, %79, %cst_29 [2] : vector<1x8x8xf32> to vector<1x8xf32>
    %81 = vector.shape_cast %80 : vector<1x8xf32> to vector<1x8x1xf32>
    %82 = vector.broadcast %81 : vector<1x8x1xf32> to vector<1x8x8xf32>
    %83 = arith.subf %79, %82 : vector<1x8x8xf32>
    %84 = math.exp %83 : vector<1x8x8xf32>
    %cst_30 = arith.constant dense<0.000000e+00> : vector<1x8xf32>
    %85 = vector.multi_reduction <add>, %84, %cst_30 [2] : vector<1x8x8xf32> to vector<1x8xf32>
    %86 = vector.shape_cast %85 : vector<1x8xf32> to vector<1x8x1xf32>
    %87 = tpu.reciprocal %86 : vector<1x8x1xf32> -> vector<1x8x1xf32>
    %88 = vector.broadcast %87 : vector<1x8x1xf32> to vector<1x8x8xf32>
    %89 = arith.mulf %84, %88 : vector<1x8x8xf32>
    "tpu.trace_start"() <{level = 10 : i32, message = "bqk,bkc->bqc"}> : () -> ()
    %cst_31 = arith.constant dense<0.000000e+00> : vector<1x8x32xf32>
    %90 = tpu.matmul %89, %76, %cst_31 {dimension_numbers = #tpu.dot_dimension_numbers<[2], [1], [1], [2], [0, 0, 0, 1, 1, 2], [0], [0]>} : vector<1x8x8xf32>, vector<1x8x32xf32>, vector<1x8x32xf32> -> vector<1x8x32xf32>
    "tpu.trace_stop"() : () -> ()
    %91 = vector.shape_cast %90 : vector<1x8x32xf32> to vector<8x32xf32>
    %c96 = arith.constant 96 : index
    %c0_32 = arith.constant 0 : index
    %92 = vector.load %arg3[%c96, %c0_32] : memref<128x32xf32, #tpu.memory_space<vmem>>, vector<32x32xf32>
    %cst_33 = arith.constant dense<0.000000e+00> : vector<8x32xf32>
    %93 = tpu.matmul %91, %92, %cst_33 {dimension_numbers = #tpu.dot_dimension_numbers<[1], [0], [0], [1], [0, 0, 1, 1], [], []>} : vector<8x32xf32>, vector<32x32xf32>, vector<8x32xf32> -> vector<8x32xf32>
    %94 = arith.addf %73, %93 : vector<8x32xf32>
    %c0_34 = arith.constant 0 : index
    %c0_35 = arith.constant 0 : index
    %95 = vector.load %arg4[%c0_34, %c0_35] : memref<1x32xf32, #tpu.memory_space<vmem>>, vector<1x32xf32>
    %96 = vector.broadcast %95 : vector<1x32xf32> to vector<8x32xf32>
    %97 = arith.addf %94, %96 : vector<8x32xf32>
    %98 = vector.shape_cast %97 : vector<8x32xf32> to vector<1x8x32xf32>
    %c0_36 = arith.constant 0 : index
    %c0_37 = arith.constant 0 : index
    %c0_38 = arith.constant 0 : index
    %99 = vector.load %arg5[%c0_36, %c0_37, %c0_38] : memref<1x8x32xf32, #tpu.memory_space<vmem>>, vector<1x8x32xf32>
    tpu.vector_store %arg5[%c0_36, %c0_37, %c0_38], %98 {strides = array<i32>} : memref<1x8x32xf32, #tpu.memory_space<vmem>>, vector<1x8x32xf32>,
    return
  }
  func.func @transform_0(%arg0: i32) -> (i32, i32, i32) {
    %c0_i32 = arith.constant 0 : i32
    %c0_i32_0 = arith.constant 0 : i32
    %c0_i32_1 = arith.constant 0 : i32
    return %arg0, %c0_i32, %c0_i32_0 : i32, i32, i32
  }
  func.func @transform_1(%arg0: i32) -> (i32, i32) {
    %c0_i32 = arith.constant 0 : i32
    %c0_i32_0 = arith.constant 0 : i32
    %c0_i32_1 = arith.constant 0 : i32
    return %c0_i32, %c0_i32_0 : i32, i32
  }
  func.func @transform_2(%arg0: i32) -> (i32, i32) {
    %c0_i32 = arith.constant 0 : i32
    %c0_i32_0 = arith.constant 0 : i32
    %c0_i32_1 = arith.constant 0 : i32
    return %c0_i32, %c0_i32_0 : i32, i32
  }
  func.func @transform_3(%arg0: i32) -> (i32, i32) {
    %c0_i32 = arith.constant 0 : i32
    %c0_i32_0 = arith.constant 0 : i32
    %c0_i32_1 = arith.constant 0 : i32
    return %c0_i32, %c0_i32_0 : i32, i32
  }
  func.func @transform_4(%arg0: i32) -> (i32, i32, i32) {
    %c0_i32 = arith.constant 0 : i32
    %c0_i32_0 = arith.constant 0 : i32
    %c0_i32_1 = arith.constant 0 : i32
    return %arg0, %c0_i32, %c0_i32_0 : i32, i32, i32
  }
}

</mosaic_0001>

<bundles_post_ra>
// kernel: tpu_custom_call.1
= control target key start
LH: loop header
LB: loop body
LE: loop exit
PB: predicated region body
PF: predicated region fallthrough
CT: control target
= control target key end

     0   :  { %9 = vsyncpa [#allocation3], 0  ;;  %s2044_s0 = inlined_call_operand.vmem [shape: f32[2,8,32], index: 0, kind: input, shape index: {}]   ;;  %s2045_s1 = inlined_call_operand.vmem [shape: f32[32,384], index: 1, kind: input, shape index: {}]   ;;  %s2046_s2 = inlined_call_operand.vmem [shape: f32[128,32], index: 2, kind: input, shape index: {}]   ;;  %s2047_s3 = inlined_call_operand.vmem [shape: f32[1,32], index: 3, kind: input, shape index: {}]   ;;  %s2048_s4 = inlined_call_operand.hbm [shape: f32[2,8,32], index: 4, kind: output, shape index: {}]  }
   0x1   :  { %11 = vsyncpa [#allocation3 + $0x1], 0  ;;  %s1764_s15 = smov 0   ;;  %s1766_s16 = smov 0  }
   0x2   :  { %s1768_s17 = smov 0   ;;  %s1770_s18 = smov 0  }
   0x3 LB: > { %s1785_s19 = sadd.s32 4294967295, %s1730_s18   ;;  %s1404_s20 = sadd.s32 4294967294, %s1730_s18   ;;  %s1730_s18 = sphi %s1770_s18, %s2054_s18   ;;  %s1726_s17 = sphi %s1768_s17, %s2053_s17   ;;  %s1722_s16 = sphi %s1766_s16, %s2052_s16   ;;  %s1718_s15 = sphi %s1764_s15, %s2051_s15  }
   0x4   : > { %s1789_s21 = sadd.s32 1, %s1730_s18   ;;  %s113_s22 = sadd.s32 1, %s1726_s17 }
   0x5   : > { %s110_s23 = ssub.s32 %s1730_s18, %s1789_s21  ;;  %p123_p0 = scmp.ne.s32.totalorder %s1726_s17, %s1722_s16 }
   0x6   : > { %p111_p1 = scmp.eq.s32.totalorder %s110_s23, 0  ;;  %p124_p2 = scmp.eq.s32.totalorder %s1785_s19, 1 }
   0x7   : > { %p129_p3 = scmp.ne.s32.totalorder %s1722_s16, %s1718_s15  ;;  %p130_p4 = scmp.eq.s32.totalorder %s1404_s20, 1 }
   0x8   : > { %s1800_s24 = scalar_select %p111_p1, %s1726_s17, %s113_s22  }
   0x9   : > { %p1802_p5 = por %p124_p2, %p123_p0  ;;  %p1806_p6 = por %p130_p4, %p129_p3 }
   0xa   : > { %p1407_p7 = scmp.ge.s32.totalorder %s1730_s18, 1  ;;  %p164_p8 = scmp.lt.s32.totalorder %s1730_s18, 3 }
   0xc   : > { %p165_p9 = pnand %p1407_p7, %p164_p8 }
   0xd   : > { %v195_v0 = vld [vmem:[%s2045_s1 + $0x8] sm:$0xff] (!%p165_p9)  ;;  %v198_v1 = vld [vmem:[%s2045_s1 + $0x20] sm:$0xff] (!%p165_p9)  ;;  %p189_p10 = scmp.lt.s32.totalorder (!%p165_p9), %s1785_s19, 1  ;;  %v197_v4 = vld [vmem:[%s2045_s1 + $0x18] sm:$0xff] (!%p165_p9)  ;;  %v1732_v7 = vmov (!%p165_p9), 0.0   ;;  %v1733_v12 = vmov (!%p165_p9), 0.0|0.0  }
   0xe   : > { %168 = sbr.rel (%p165_p9) target bundleno = 2603 (0xa2b), region = 36  ;;  %v194_v2 = vld [vmem:[%s2045_s1] sm:$0xff] (!%p165_p9)  ;;  %v1569_v3 = vpack.c.bf16 (!%p165_p9), %v198_v1, %v195_v0  ;;  %v201_v5 = vld [vmem:[%s2045_s1 + $0x38] sm:$0xff] (!%p165_p9)  ;;  %v204_v6 = vld [vmem:[%s2045_s1 + $0x50] sm:$0xff] (!%p165_p9)  ;;  %274 = vmatprep.mubr.f32.mxu0 (!%p165_p9), %v1732_v7  ;;  %1577 = vmatprep.subr.bf16.mxu1 (!%p165_p9), %v1733_v12  ;;  %vm1734_vm0 = vmmov (!%p165_p9), 0   ;;  %vm206_vm1 = vcmask (!%p165_p9), 261120  }
   0xf   : > { %v1571_v8 = vpack.c.bf16 (!%p165_p9), %v197_v4, %v194_v2  ;;  %v1573_v9 = vpack.c.bf16 (!%p165_p9), %v204_v6, %v201_v5  ;;  %v200_v10 = vld [vmem:[%s2045_s1 + $0x30] sm:$0xff] (!%p165_p9)  ;;  %v203_v11 = vld [vmem:[%s2045_s1 + $0x48] sm:$0xff] (!%p165_p9)  ;;  %1482 = vmatprep.mubr.msk.f32.mxu1 (!%p165_p9), %vm1734_vm0, %v1732_v7  ;;  %v202_v15 = vld [vmem:[%s2045_s1 + $0x40] sm:$0xff] (!%p165_p9)  ;;  %s1735_s13 = smov (!%p165_p9), 96   ;;  %vm428_vm2 = vcmask (!%p165_p9), 64512   ;;  %s1736_s14 = smov (!%p165_p9), 64  }
  0x10   : > { %v196_v13 = vld [vmem:[%s2045_s1 + $0x10] sm:$0xff] (!%p165_p9)  ;;  %1570 = vmatprep.subr.bf16.mxu0 (!%p165_p9), %v1569_v3  ;;  %v199_v14 = vld [vmem:[%s2045_s1 + $0x28] sm:$0xff] (!%p165_p9)  ;;  %v205_v16 = vld [vmem:[%s2045_s1 + $0x58] sm:$0xff] (!%p165_p9)  ;;  %v1575_v17 = vpack.c.bf16 (!%p165_p9), %v203_v11, %v200_v10  ;;  %s1737_s20 = smov (!%p165_p9), 32   ;;  %s1430_s28 = sshll.u32 (!%p165_p9), %s1785_s19, 7 }
  0x11   : > { %1572 = vmatpush1.bf16.msra.mxu0 (!%p165_p9), %v1571_v8  ;;  %v1578_v18 = vpack.c.bf16 (!%p165_p9), %v199_v14, %v196_v13  ;;  %v1581_v19 = vpack.c.bf16 (!%p165_p9), %v205_v16, %v202_v15  ;;  %v684_v48 = vld [vmem:[%s2046_s2 + $0x20] sm:$0xff] (!%p165_p9)  ;;  %v685_v49 = vld [vmem:[%s2046_s2 + $0x28] sm:$0xff] (!%p165_p9)  ;;  %v686_v50 = vld [vmem:[%s2046_s2 + $0x30] sm:$0xff] (!%p165_p9)  ;;  %s2001_s7 = scalar_lea.hbm (!%p165_p9), %s2048_s4, %s1430_s28 }
  0x12   : > { %1574 = vmatprep.subr.bf16.mxu0 (!%p165_p9), %v1573_v9  ;;  %v1584_v51 = vpack.c.bf16 (!%p165_p9), %v685_v49, %v684_v48  ;;  %v687_v52 = vld [vmem:[%s2046_s2 + $0x38] sm:$0xff] (!%p165_p9)  ;;  %v513_v56 = vld [vmem:[%s2046_s2] sm:$0xff] (!%p165_p9)  ;;  %v514_v57 = vld [vmem:[%s2046_s2 + $0x8] sm:$0xff] (!%p165_p9) }
  0x13   : > { %1579 = vmatpush3.bf16.msra.mxu1 (!%p165_p9), %v1578_v18  ;;  %v1587_v53 = vpack.c.bf16 (!%p165_p9), %v687_v52, %v686_v50  ;;  %v1590_v59 = vpack.c.bf16 (!%p165_p9), %v514_v57, %v513_v56  ;;  %v515_v61 = vld [vmem:[%s2046_s2 + $0x10] sm:$0xff] (!%p165_p9)  ;;  %v516_v62 = vld [vmem:[%s2046_s2 + $0x18] sm:$0xff] (!%p165_p9) }
  0x14   : > { %1580 = vmatprep.subr.bf16.mxu1 (!%p165_p9), %v1733_v12  ;;  %v1593_v63 = vpack.c.bf16 (!%p165_p9), %v516_v62, %v515_v61  ;;  %v1247_v49 = vld [vmem:[%s2046_s2 + $0x78] sm:$0xff] (!%p165_p9) }
  0x15   : > { %s190_s23 = scalar_select %p189_p10, %s1785_s19, 1  ;;  %1576 = vmatpush1.bf16.msra.mxu0 %v1575_v17 }
  0x16   : > { %1495 = vmatprep.subr.mxu0 %v1732_v7  ;;  %s1738_s19 = smov [#allocation2]  }
  0x17   : > { %s1409_s9 = sshll.u32 %s190_s23, 3  ;;  %1582 = vmatpush3.bf16.msra.mxu1 %v1581_v19  ;;  %s1672_s10 = sshll.u32 %s1738_s19, 4  ;;  %s1673_s10 = int_to_ptr.vmem [resolvable:$false] %s1672_s10 }
  0x18   : > { %s192_s12 = scalar_lea.vmem %s2044_s0, %s1409_s9  ;;  %1485 = vmatprep.subr.mxu1 %v1732_v7  ;;  %s1674_s11 = scalar_lea.vmem %s1673_s10, 256 }
  0x19   : > { %v193_v20 = vld [vmem:[%s192_s12] sm:$0xff] }
  0x1a   : > { %1410 = vmatmul.mubr.msk.f32.vlgmr.msra.gmra.mrb[0].mxu0 %vm206_vm1, %v193_v20  ;;  %1483 = vmatmul.mubr.msk.f32.vlgmr.msra.gmra.mrb[0].mxu1 %vm206_vm1, %v193_v20 }
  0x1b   : > { %1497 = vmatprep.mubr.msk.f32.mxu0 %vm1734_vm0, %v1732_v7  ;;  %1487 = vmatprep.mubr.msk.f32.mxu1 %vm1734_vm0, %v1732_v7 }
  0xed   : > { %v276_v21 = vpop.f32.mrb[0].mxu0  ;;  %v1870_v23 = vpop.f32.mrb[0].mxu1 }
  0xee   : > { %519 = vrot.lane.b32.xlu0 %v276_v21, %s1735_s13  ;;  %v1867_v22 = vpop.f32.mrb[1].mxu0  ;;  %1486 = vmatpush3.xpose.msk.msra.mxu1 %vm206_vm1, %v276_v21  ;;  %v1484_v24 = vpop.f32.mrb[1].mxu1 }
  0xef   : > { %1490 = vmatprep.subr.mxu1 %v1732_v7 }
  0xf1   : > { %1488 = vmatmul.mubr.msk.f32.vlgmr.msra.gmra.mrb[2].mxu1 %vm206_vm1, %v1867_v22 }
  0xf2   : > { %517 = vrot.lane.b32.xlu0 %v1867_v22, %s1735_s13  ;;  %1491 = vmatpush3.msra.mxu1 %v1870_v23 }
  0xf3   : > { %1492 = vmatprep.mubr.msk.f32.mxu1 %vm1734_vm0, %v1732_v7  ;;  %1500 = vmatprep.subr.mxu1 %v1732_v7 }
 0x160   : > { %v520_v25 = vpop.permute.xlu0 %519 }
 0x161   : > { %1496 = vmatpush3.xpose.msk.msra.mxu0 %vm206_vm1, %v520_v25  ;;  %v1000_v25 = vld [vmem:[%s2046_s2 + $0x40] sm:$0xff] }
 0x162   : > { %1583 = vmatprep.subr.bf16.mxu0 %v1733_v12 }
 0x164   : > { %v518_v26 = vpop.permute.xlu0 %517 }
 0x165   : > { %1498 = vmatmul.mubr.msk.f32.vlgmr.msra.gmra.mrb[2].mxu0 %vm206_vm1, %v518_v26  ;;  %v1001_v26 = vld [vmem:[%s2046_s2 + $0x48] sm:$0xff] }
 0x166   : > { %1513 = vmatprep.mubr.msk.f32.mxu0 %vm1734_vm0, %v1732_v7  ;;  %1585 = vmatpush3.bf16.msra.mxu0 %v1584_v51 }
 0x167   : > { %1586 = vmatprep.subr.bf16.mxu0 %v1733_v12 }
 0x16a   : > { %1588 = vmatpush3.bf16.msra.mxu0 %v1587_v53 }
 0x16b   : > { %1527 = vmatprep.subr.mxu0 %v1732_v7 }
 0x1c4   : > { %v423_v27 = vpop.f32.mrb[2].mxu1 }
 0x1c5   : > { %v427_v28 = vmul.f32 0.17677669, %v423_v27  ;;  %v1489_v29 = vpop.f32.mrb[3].mxu1  ;;  %v1002_v27 = vld [vmem:[%s2046_s2 + $0x50] sm:$0xff] }
 0x1c6   : > { %v1003_v29 = vld [vmem:[%s2046_s2 + $0x58] sm:$0xff] }
 0x1c7   : > { %v429_v30 = vsel %vm428_vm2, %v427_v28, -inf }
 0x1c8   : > { %430 = vmax.xlane.f32.xlu1 %v429_v30  ;;  %v1599_v30 = vpack.c.bf16 %v1003_v29, %v1002_v27 }
 0x238   : > { %v591_v31 = vpop.f32.mrb[2].mxu0 }
 0x239   : > { %v595_v32 = vmul.f32 0.17677669, %v591_v31  ;;  %v1499_v33 = vpop.f32.mrb[3].mxu0 }
 0x23b   : > { %v596_v34 = vsel %vm428_vm2, %v595_v32, -inf }
 0x23c   : > { %597 = vmax.xlane.f32.xlu1 %v596_v34 }
 0x255   : > { %v431_v35 = vpop.xlane.xlu1 %430 }
 0x256   : > { %v432_v36 = vsub.f32 %v427_v28, %v431_v35  ;;  %v1596_v28 = vpack.c.bf16 %v1001_v26, %v1000_v25 }
 0x258   : > { %v433_v37 = vmul.f32 1.442695, %v432_v36 }
 0x25a   : > { %1652 = vpow2.f32 %v433_v37 }
 0x264   : > { %v1653_v38 = vpop.eup %1652 }
 0x265   : > { %v435_v39 = vsel %vm428_vm2, %v1653_v38, 0.0 }
 0x266   : > { %436 = vadd.xlane.f32.xlu0 %v435_v39 }
 0x27c   : > { %924 = vrot.lane.b32.xlu0 %v1870_v23, %s1736_s14 }
 0x280   : > { %1080 = vrot.lane.b32.xlu0 %v276_v21, %s1737_s20 }
 0x2c9   : > { %v598_v40 = vpop.xlane.xlu1 %597 }
 0x2ca   : > { %v599_v41 = vsub.f32 %v595_v32, %v598_v40 }
 0x2cc   : > { %v600_v42 = vmul.f32 1.442695, %v599_v41 }
 0x2ce   : > { %1654 = vpow2.f32 %v600_v42 }
 0x2d8   : > { %v1655_v43 = vpop.eup %1654 }
 0x2d9   : > { %v602_v44 = vsel %vm428_vm2, %v1655_v43, 0.0 }
 0x2da   : > { %603 = vadd.xlane.f32.xlu1 %v602_v44 }
 0x2eb   : > { %608 = vrot.lane.b32.xlu1 %v1870_v23, %s1735_s13 }
 0x2ef   : > { %836 = vrot.lane.b32.xlu1 %v276_v21, %s1736_s14 }
 0x2f3   : > { %v437_v45 = vpop.xlane.xlu0 %436  ;;  %834 = vrot.lane.b32.xlu1 %v1867_v22, %s1736_s14 }
 0x2f4   : > { %1656 = vrcp.f32 %v437_v45 }
 0x2f7   : > { %v925_v1 = vpop.permute.xlu0 %924 }
 0x2fe   : > { %v1657_v46 = vpop.eup %1656 }
 0x2ff   : > { %v439_v47 = vmul.f32 %v1657_v46, %v1653_v38  ;;  %v1245_v46 = vld [vmem:[%s2046_s2 + $0x68] sm:$0xff] }
 0x301   : > { %1493 = vmatmul.mubr.msk.f32.vlgmr.msra.gmra.mrb[4].mxu1 %vm428_vm2, %v439_v47  ;;  %v1246_v47 = vld [vmem:[%s2046_s2 + $0x70] sm:$0xff] }
 0x302   : > { %1502 = vmatprep.mubr.msk.f32.mxu1 %vm1734_vm0, %v1732_v7  ;;  %v1605_v50 = vpack.c.bf16 %v1247_v49, %v1246_v47 }
 0x367   : > { %v604_v54 = vpop.xlane.xlu1 %603 }
 0x368   : > { %1658 = vrcp.f32 %v604_v54 }
 0x36b   : > { %v609_v55 = vpop.permute.xlu1 %608 }
 0x36c   : > { %1501 = vmatpush3.msra.mxu1 %v609_v55 }
 0x36d   : > { %1589 = vmatprep.subr.bf16.mxu1 %v1733_v12 }
 0x36f   : > { %v837_v3 = vpop.permute.xlu1 %836 }
 0x372   : > { %v1659_v58 = vpop.eup %1658 }
 0x373   : > { %v606_v60 = vmul.f32 %v1659_v58, %v1655_v43  ;;  %v835_v6 = vpop.permute.xlu1 %834 }
 0x375   : > { %1503 = vmatmul.mubr.msk.f32.vlgmr.msra.gmra.mrb[6].mxu1 %vm428_vm2, %v606_v60 }
 0x376   : > { %1591 = vmatpush3.bf16.msra.mxu1 %v1590_v59  ;;  %1524 = vmatprep.mubr.msk.f32.mxu1 %vm1734_vm0, %v1732_v7  ;;  %v1428_v59 = vld [vmem:[%s2047_s3] ss:$0 sm:$0xff] }
 0x377   : > { %1592 = vmatprep.subr.bf16.mxu1 %v1733_v12 }
 0x37a   : > { %1594 = vmatpush3.bf16.msra.mxu1 %v1593_v63 }
 0x37b   : > { %1532 = vmatprep.subr.mxu1 %v1732_v7 }
 0x3d4   : > { %v509_v0 = vpop.f32.mrb[4].mxu1 }
 0x3d5   : > { %v1494_v2 = vpop.f32.mrb[5].mxu1  ;;  %1525 = vmatmul.mubr.msk.f32.vlgmr.msra.gmra.mrb[8].mxu1 %vm206_vm1, %v509_v0 }
 0x3d6   : > { %1533 = vmatpush3.msra.mxu1 %v925_v1  ;;  %1534 = vmatprep.mubr.msk.f32.mxu1 %vm1734_vm0, %v1732_v7 }
 0x3d7   : > { %1548 = vmatprep.subr.mxu1 %v1732_v7 }
 0x448   : > { %v680_v4 = vpop.f32.mrb[6].mxu1 }
 0x449   : > { %v1504_v5 = vpop.f32.mrb[7].mxu1  ;;  %1514 = vmatmul.mubr.msk.f32.vlgmr.msra.gmra.mrb[4].mxu0 %vm206_vm1, %v680_v4 }
 0x44a   : > { %1528 = vmatpush3.xpose.msk.msra.mxu0 %vm206_vm1, %v837_v3  ;;  %1529 = vmatprep.mubr.msk.f32.mxu0 %vm1734_vm0, %v1732_v7 }
 0x44b   : > { %1595 = vmatprep.subr.bf16.mxu0 %v1733_v12 }
 0x44d   : > { %1530 = vmatmul.mubr.msk.f32.vlgmr.msra.gmra.mrb[6].mxu0 %vm206_vm1, %v835_v6 }
 0x44e   : > { %1545 = vmatprep.mubr.msk.f32.mxu0 %vm1734_vm0, %v1732_v7  ;;  %1597 = vmatpush3.bf16.msra.mxu0 %v1596_v28 }
 0x44f   : > { %1598 = vmatprep.subr.bf16.mxu0 %v1733_v12 }
 0x452   : > { %1600 = vmatpush3.bf16.msra.mxu0 %v1599_v30 }
 0x453   : > { %1601 = vmatprep.subr.bf16.mxu0 %v1733_v12 }
 0x4a8   : > { %v830_v8 = vpop.f32.mrb[8].mxu1 }
 0x4a9   : > { %v1526_v9 = vpop.f32.mrb[9].mxu1 }
 0x51c   : > { %v757_v10 = vpop.f32.mrb[4].mxu0 }
 0x51d   : > { %v1942_v11 = vadd.f32 %v830_v8, %v757_v10  ;;  %v1515_v13 = vpop.f32.mrb[5].mxu0 }
 0x520   : > { %v908_v14 = vpop.f32.mrb[6].mxu0 }
 0x521   : > { %v912_v15 = vmul.f32 0.17677669, %v908_v14  ;;  %v1531_v16 = vpop.f32.mrb[7].mxu0 }
 0x523   : > { %v913_v17 = vsel %vm428_vm2, %v912_v15, -inf }
 0x524   : > { %914 = vmax.xlane.f32.xlu1 %v913_v17 }
 0x5b1   : > { %v915_v18 = vpop.xlane.xlu1 %914 }
 0x5b2   : > { %v916_v19 = vsub.f32 %v912_v15, %v915_v18 }
 0x5b4   : > { %v917_v20 = vmul.f32 1.442695, %v916_v19 }
 0x5b6   : > { %1660 = vpow2.f32 %v917_v20 }
 0x5c0   : > { %v1661_v21 = vpop.eup %1660 }
 0x5c1   : > { %v919_v24 = vsel %vm428_vm2, %v1661_v21, 0.0 }
 0x5c2   : > { %920 = vadd.xlane.f32.xlu0 %v919_v24 }
 0x5d8   : > { %1078 = vrot.lane.b32.xlu0 %v1867_v22, %s1737_s20  ;;  %v1081_v22 = vpop.permute.xlu0 %1080 }
 0x64f   : > { %v921_v31 = vpop.xlane.xlu0 %920 }
 0x650   : > { %1662 = vrcp.f32 %v921_v31 }
 0x653   : > { %v1079_v34 = vpop.permute.xlu0 %1078 }
 0x65a   : > { %v1663_v32 = vpop.eup %1662 }
 0x65b   : > { %v923_v33 = vmul.f32 %v1663_v32, %v1661_v21 }
 0x65d   : > { %1535 = vmatmul.mubr.msk.f32.vlgmr.msra.gmra.mrb[10].mxu1 %vm428_vm2, %v923_v33 }
 0x65e   : > { %1549 = vmatpush3.xpose.msk.msra.mxu1 %vm206_vm1, %v1081_v22  ;;  %1550 = vmatprep.mubr.msk.f32.mxu1 %vm1734_vm0, %v1732_v7 }
 0x65f   : > { %1553 = vmatprep.subr.mxu1 %v1732_v7 }
 0x661   : > { %1551 = vmatmul.mubr.msk.f32.vlgmr.msra.gmra.mrb[12].mxu1 %vm206_vm1, %v1079_v34 }
 0x662   : > { %1555 = vmatprep.mubr.msk.f32.mxu1 %vm1734_vm0, %v1732_v7 }
 0x730   : > { %v996_v35 = vpop.f32.mrb[10].mxu1 }
 0x731   : > { %v1536_v36 = vpop.f32.mrb[11].mxu1  ;;  %1546 = vmatmul.mubr.msk.f32.vlgmr.msra.gmra.mrb[8].mxu0 %vm206_vm1, %v996_v35 }
 0x732   : > { %1566 = vmatprep.mubr.msk.f32.mxu0 %vm1734_vm0, %v1732_v7  ;;  %v1244_v7 = vld [vmem:[%s2046_s2 + $0x60] sm:$0xff] }
 0x733   : > { %v1602_v48 = vpack.c.bf16 %v1245_v46, %v1244_v7 }
 0x734   : > { %v1152_v37 = vpop.f32.mrb[12].mxu1 }
 0x735   : > { %v1156_v38 = vmul.f32 0.17677669, %v1152_v37  ;;  %v1552_v39 = vpop.f32.mrb[13].mxu1  ;;  %1603 = vmatpush3.bf16.msra.mxu0 %v1602_v48 }
 0x736   : > { %1604 = vmatprep.subr.bf16.mxu0 %v1733_v12 }
 0x737   : > { %v1157_v40 = vsel %vm428_vm2, %v1156_v38, -inf }
 0x738   : > { %1158 = vmax.xlane.f32.xlu0 %v1157_v40 }
 0x739   : > { %1606 = vmatpush3.bf16.msra.mxu0 %v1605_v50 }
 0x7c5   : > { %v1159_v41 = vpop.xlane.xlu0 %1158 }
 0x7c6   : > { %v1160_v42 = vsub.f32 %v1156_v38, %v1159_v41 }
 0x7c8   : > { %v1161_v43 = vmul.f32 1.442695, %v1160_v42 }
 0x7ca   : > { %1664 = vpow2.f32 %v1161_v43 }
 0x7d4   : > { %v1665_v44 = vpop.eup %1664 }
 0x7d5   : > { %v1163_v45 = vsel %vm428_vm2, %v1665_v44, 0.0 }
 0x7d6   : > { %1164 = vadd.xlane.f32.xlu1 %v1163_v45 }
 0x7e7   : > { %1168 = vrot.lane.b32.xlu1 %v1870_v23, %s1737_s20  ;;  %s186_s20 = sand.u32 1, %s1722_s16  }
 0x7e8   : > { %s1408_s22 = sshll.u32 %s186_s20, 3  ;;  %s1332_s8 = scalar_lea.sflag [#allocation3], %s186_s20 }
 0x7e9   : > { %s188_s29 = scalar_lea.vmem [#allocation2], %s1408_s22 }
 0x7ea   : > { %s1345_s30 = sshll.u32 %s188_s29, 4  ;;  %s2003_s30 = int_to_ptr.vmem [resolvable:$true] %s1345_s30 }
 0x7eb   : > { %s1668_s9 = scalar_lea.vmem %s2003_s30, 128  ;;  %p1675_p0 = scmp.lt.s32.totalorder %s2003_s30, %s1673_s10 }
 0x7ec   : > { %p1669_p11 = scmp.ne.s32.totalorder %s2003_s30, %s1668_s9  ;;  %p1676_p1 = scmp.lt.s32.totalorder %s1674_s11, %s1668_s9 }
 0x7ee   : > { %p1670_p12 = pnand %p1669_p11, %p1802_p5  ;;  %p1677_p2 = por %p1676_p1, %p1675_p0 }
 0x7f0   : > { %p1671_p13 = pneg %p1670_p12 }
 0x7f2   : > { %p1678_p3 = pnand %p1677_p2, %p1671_p13 }
 0x804   : > { %v1073_v23 = vpop.f32.mrb[8].mxu0 }
 0x805   : > { %v1077_v51 = vadd.f32 %v1073_v23, %v1942_v11  ;;  %v1547_v52 = vpop.f32.mrb[9].mxu0 }
 0x863   : > { %v1165_v53 = vpop.xlane.xlu1 %1164 }
 0x864   : > { %1666 = vrcp.f32 %v1165_v53 }
 0x867   : > { %v1169_v54 = vpop.permute.xlu1 %1168 }
 0x868   : > { %1554 = vmatpush3.msra.mxu1 %v1169_v54 }
 0x86e   : > { %v1667_v55 = vpop.eup %1666 }
 0x86f   : > { %v1167_v56 = vmul.f32 %v1667_v55, %v1665_v44 }
 0x871   : > { %1556 = vmatmul.mubr.msk.f32.vlgmr.msra.gmra.mrb[14].mxu1 %vm428_vm2, %v1167_v56 }
 0x944   : > { %v1240_v57 = vpop.f32.mrb[14].mxu1 }
 0x945   : > { %v1557_v58 = vpop.f32.mrb[15].mxu1  ;;  %1567 = vmatmul.mubr.msk.f32.vlgmr.msra.gmra.mrb[10].mxu0 %vm206_vm1, %v1240_v57 }
 0xa18   : > { %v1317_v12 = vpop.f32.mrb[10].mxu0 }
 0xa19   : > { %v1321_v60 = vadd.f32 %v1317_v12, %v1077_v51  ;;  %v1568_v61 = vpop.f32.mrb[11].mxu0 }
 0xa1b   : > { %v1329_v62 = vadd.f32 %v1428_v59, %v1321_v60 }
 0xa1d   : > { %1330 = vst.msk [vmem:[%s188_s29] sm:$0xff] %vm206_vm1, %v1329_v62 }
 0xa1e   : > { %1681 = shalt.err (!%p1678_p3)
}
 0xa1f   : > { %s1682_s12 = scalar_lea.hbm %s2001_s7, 128  ;;  %s1686_s20 = scalar_lea.hbm %s2048_s4, 256 }
 0xa20   : > { %p1683_p4 = scmp.ne.s32.totalorder %s2001_s7, %s1682_s12  ;;  %p1687_p9 = scmp.lt.u32.totalorder %s2001_s7, %s2048_s4 }
 0xa21   : > { %p1688_p10 = scmp.lt.u32.totalorder %s1686_s20, %s1682_s12  ;;  %p1690_p12 = scmp.lt.u32.totalorder %s1682_s12, %s2001_s7 }
 0xa22   : > { %p1684_p7 = pnand %p1683_p4, %p1802_p5 }
 0xa23   : > { %p1689_p11 = por %p1688_p10, %p1687_p9 }
 0xa24   : > { %p1685_p8 = pneg %p1684_p7 }
 0xa25   : > { %p1691_p13 = por %p1690_p12, %p1689_p11 }
 0xa27   : > { %p1692_p0 = pnand %p1691_p13, %p1685_p8 }
 0xa29   : > { %1695 = shalt.err (!%p1692_p0)
}
 0xa2a   : > { %1607 = dma.vmem_to_hbm [thread:$0]  (%p1802_p5), %s2003_s30, 128, %s2001_s7, %s1332_s8  }
 0xa2b PF: > { %p1613_p1 = scmp.ge.s32.totalorder %s1730_s18, 2  ;;  %s1357_s27 = sand.u32 1, %s1718_s15  }
 0xa2c   : > { %s1358_s28 = scalar_lea.sflag [#allocation3], %s1357_s27 }
 0xa2d   : > { %p1610_p2 = pnand %p1613_p1, %p1806_p6 }
 0xa2f   : > { %1713 = dma.done.wait (!%p1610_p2), %s1358_s28, 128  }
 0xa30   : > { %1715 = vsyncadd (!%p1610_p2), %s1358_s28, 4294967168  ;;  %p14_p3 = scmp.ge.s32.totalorder %s1789_s21, 4   ;;  %s2051_s15 = smov %s1722_s16 }
 0xa31   : > { %s2052_s16 = smov %s1726_s17  ;;  %s2053_s17 = smov %s1800_s24 }
 0xa32   : > { %s2054_s18 = smov %s1789_s21  ;;  %16 = sbr.rel (!%p14_p3) target bundleno = 3 (0x3), region = 71 }
 0xa39   :  { %1363 = vsyncpa [#allocation3], 1 }
 0xa3a   :  { %1365 = vsyncpa [#allocation3 + $0x1], 1 }

</bundles_post_ra>
